<compile_context>
chip_gen: v7x
topology: tpu7x:2x2x1
jax: 0.10.0
libtpu: 0.0.40
codegen_flags: <defaults>
</compile_context>

<pallas_src>
import functools

import jax
import jax.numpy as jnp
from jax.experimental import pallas as pl
from jax.experimental.pallas import tpu as pltpu


# ----------------------------- config (synthetic) -----------------------------
class configs:
    T = 2                 # slow-path temporal length
    alpha = 4             # fast path has alpha * T frames
    beta_inv = 8          # fast channels = slow channels // beta_inv
    dim_out = [64]        # slow-path output channels (last stage)
    num_classes = 10


# ------------------------------- Pallas kernel --------------------------------
def reshead_kernel(slow_ref, fast_ref, ws_ref, wf_ref, b_ref, o_ref):
    # slow_ref: [bb, Cs, Ns]   fast_ref: [bb, Cf, Nf]
    # ws_ref:   [Cs, Kpad]     wf_ref:   [Cf, Kpad]   (1/N pooling scales folded in)
    # b_ref:    [1, Kpad]      (padded classes carry -1e30)
    # o_ref:    [bb, Kpad]

    # AvgPool3d over the full (T,7,7) window == sum over the flattened lane
    # axis (1/N already folded into the weight).  XLU reduction; MXU/VPU idle.
    slow_sum = jnp.sum(slow_ref[...], axis=-1)   # [bb, Cs] f32
    fast_sum = jnp.sum(fast_ref[...], axis=-1)   # [bb, Cf] f32

    # Dropout is identity in eval mode.
    # TODO(synk): training-mode dropout (pltpu.prng_seed/prng_random_bits) not implemented.

    # Two MXU passes (no VMEM feature scratch):  slow@Ws + fast@Wf + b
    # == Linear(concat([slow_mean, fast_mean])) of the reference.
    logits = (
        jnp.dot(slow_sum, ws_ref[...], preferred_element_type=jnp.float32)
        + jnp.dot(fast_sum, wf_ref[...], preferred_element_type=jnp.float32)
        + b_ref[...]
    )  # [bb, Kpad]

    # Softmax over classes; padded classes have logit ~ -1e30 -> exp == 0.
    m = jnp.max(logits, axis=-1, keepdims=True)
    e = jnp.exp(logits - m)
    inv = pl.reciprocal(jnp.sum(e, axis=-1, keepdims=True), approx=False)
    o_ref[...] = e * inv


# ------------------------- one-time parameter folding --------------------------
def prepare_reshead_params(w, b, Cs, Cf, Ns, Nf):
    """Fold the AvgPool 1/N scales into the Linear weight and pad the class dim
    to a lane-dense multiple of 128.  Call ONCE when weights are loaded — this
    is hoisted out of the per-call forward path."""
    K = w.shape[0]
    Kpad = ((K + 127) // 128) * 128
    w_t = w.astype(jnp.float32).T                         # [Cs+Cf, K]
    w_slow = jnp.zeros((Cs, Kpad), jnp.float32).at[:, :K].set(w_t[:Cs] * (1.0 / Ns))
    w_fast = jnp.zeros((Cf, Kpad), jnp.float32).at[:, :K].set(
        w_t[Cs:Cs + Cf] * (1.0 / Nf))
    # Padded classes get a huge negative bias so softmax ignores them.
    # (Fine in f32/bf16; would overflow f16 — revisit if logits dtype changes.)
    b_pad = jnp.full((1, Kpad), -1e30, jnp.float32).at[0, :K].set(
        b.astype(jnp.float32))
    return w_slow, w_fast, b_pad


def _pick_block_b(B):
    # v7x: force >=2 grid steps once B >= 16 so ("parallel",) can shard the
    # batch grid across both TensorCores; keep bb a multiple of 8 (unmasked
    # sublane-aligned DMAs/stores) and cap at 128 (~13 MB double-buffered
    # working set -> fits v5e's 16 MiB default scoped VMEM; v6e users with
    # huge stacked-view batches can pass block_b=256 explicitly).
    if B < 16:
        return B
    bb = -(-B // 2)                 # cdiv(B, 2)
    bb = ((bb + 7) // 8) * 8        # round up to a multiple of 8
    return min(bb, 128)


# --------------------------------- wrapper -------------------------------------
@functools.partial(jax.jit, static_argnames=("num_classes", "block_b"))
def res_head_forward(x_slow, x_fast, w_slow, w_fast, b_pad, *,
                     num_classes, block_b=None):
    """x_slow: [B, Cs, T, 7, 7], x_fast: [B, Cf, alpha*T, 7, 7] (NCTHW).
    w_slow/w_fast/b_pad: outputs of prepare_reshead_params (folded + padded)."""
    B, Cs = x_slow.shape[0], x_slow.shape[1]
    Cf = x_fast.shape[1]
    Ns = x_slow.shape[2] * x_slow.shape[3] * x_slow.shape[4]
    Nf = x_fast.shape[2] * x_fast.shape[3] * x_fast.shape[4]
    Kpad = b_pad.shape[1]

    # Pure reshape for NCTHW (no data reordering): pooled window -> lane axis.
    slow_flat = x_slow.reshape(B, Cs, Ns)
    fast_flat = x_fast.reshape(B, Cf, Nf)

    bb = _pick_block_b(B) if block_b is None else block_b
    num_blocks = pl.cdiv(B, bb)   # ragged last block handled by Pallas (no jnp.pad)

    out = pl.pallas_call(
        reshead_kernel,
        out_shape=jax.ShapeDtypeStruct((B, Kpad), jnp.float32),
        grid=(num_blocks,),
        in_specs=[
            pl.BlockSpec((bb, Cs, Ns), lambda i: (i, 0, 0)),   # slow activations
            pl.BlockSpec((bb, Cf, Nf), lambda i: (i, 0, 0)),   # fast activations
            pl.BlockSpec((Cs, Kpad), lambda i: (0, 0)),        # folded slow weight
            pl.BlockSpec((Cf, Kpad), lambda i: (0, 0)),        # folded fast weight
            pl.BlockSpec((1, Kpad), lambda i: (0, 0)),         # padded bias
        ],
        out_specs=pl.BlockSpec((bb, Kpad), lambda i: (i, 0)),
        compiler_params=pltpu.CompilerParams(
            dimension_semantics=("parallel",)),
    )(slow_flat, fast_flat, w_slow, w_fast, b_pad)

    # Strip class-lane padding (batch was never padded).
    return out[:, :num_classes]


# ---------------------------------- main ---------------------------------------
if __name__ == "__main__":
    key = jax.random.PRNGKey(0)
    k1, k2, k3, k4 = jax.random.split(key, 4)

    B = 2
    Cs = configs.dim_out[-1]                      # 64
    Cf = configs.dim_out[-1] // configs.beta_inv  # 8
    T_slow = configs.T                            # 2
    T_fast = configs.alpha * configs.T            # 8
    K = configs.num_classes                       # 10
    Ns = T_slow * 7 * 7                           # 98
    Nf = T_fast * 7 * 7                           # 392

    x_slow = jax.random.normal(k1, (B, Cs, T_slow, 7, 7), dtype=jnp.float32)
    x_fast = jax.random.normal(k2, (B, Cf, T_fast, 7, 7), dtype=jnp.float32)

    # Deterministic Linear params (PyTorch layout: weight [K, Cs+Cf], bias [K]).
    w = jax.random.normal(k3, (K, Cs + Cf), dtype=jnp.float32) * 0.05
    b = jax.random.normal(k4, (K,), dtype=jnp.float32) * 0.01

    # One-time folding (hoisted out of the per-call path).
    w_slow, w_fast, b_pad = prepare_reshead_params(w, b, Cs, Cf, Ns, Nf)
    w_slow, w_fast, b_pad = jax.block_until_ready((w_slow, w_fast, b_pad))

    out = res_head_forward(x_slow, x_fast, w_slow, w_fast, b_pad, num_classes=K)
    out = jax.block_until_ready(out)

    # Pure-JAX reference for sanity.
    slow_p = jnp.mean(x_slow.reshape(B, Cs, -1), axis=-1)
    fast_p = jnp.mean(x_fast.reshape(B, Cf, -1), axis=-1)
    feat = jnp.concatenate([slow_p, fast_p], axis=1)
    ref = jax.nn.softmax(feat @ w.T + b, axis=1)

    assert out.shape == (B, K)
    assert jnp.allclose(out, ref, atol=1e-5, rtol=1e-5)
    assert jnp.allclose(jnp.sum(out, axis=1), 1.0, atol=1e-5)

    print("KERNEL_OK")
</pallas_src>

<mosaic_0001>
module attributes {stable_mosaic.version = 11 : i64} {
  func.func @reshead_kernel(%arg0: i32, %arg1: memref<2x64x98xf32, #tpu.memory_space<vmem>>, %arg2: memref<2x8x392xf32, #tpu.memory_space<vmem>>, %arg3: memref<64x128xf32, #tpu.memory_space<vmem>>, %arg4: memref<8x128xf32, #tpu.memory_space<vmem>>, %arg5: memref<1x128xf32, #tpu.memory_space<vmem>>, %arg6: memref<2x128xf32, #tpu.memory_space<vmem>>) attributes {dimension_semantics = [#tpu.dimension_semantics<parallel>], iteration_bounds = array<i64: 1>, scalar_prefetch = 0 : i64, scratch_operands = 0 : i64, tpu.core_type = #tpu.core_type<tc>, window_params = [{transform_indices = @transform_0, window_bounds = array<i64: 2, 64, 98>}, {transform_indices = @transform_1, window_bounds = array<i64: 2, 8, 392>}, {pipeline_mode = #tpu.pipeline_mode<synchronous>, transform_indices = @transform_2, window_bounds = array<i64: 64, 128>}, {pipeline_mode = #tpu.pipeline_mode<synchronous>, transform_indices = @transform_3, window_bounds = array<i64: 8, 128>}, {pipeline_mode = #tpu.pipeline_mode<synchronous>, transform_indices = @transform_4, window_bounds = array<i64: 1, 128>}, {transform_indices = @transform_5, window_bounds = array<i64: 2, 128>}]} {
    %c0 = arith.constant 0 : index
    %c0_0 = arith.constant 0 : index
    %c0_1 = arith.constant 0 : index
    %0 = vector.load %arg1[%c0, %c0_0, %c0_1] : memref<2x64x98xf32, #tpu.memory_space<vmem>>, vector<2x64x98xf32>
    %cst = arith.constant dense<0.000000e+00> : vector<2x64xf32>
    %1 = vector.multi_reduction <add>, %0, %cst [2] : vector<2x64x98xf32> to vector<2x64xf32>
    %c0_2 = arith.constant 0 : index
    %c0_3 = arith.constant 0 : index
    %c0_4 = arith.constant 0 : index
    %2 = vector.load %arg2[%c0_2, %c0_3, %c0_4] : memref<2x8x392xf32, #tpu.memory_space<vmem>>, vector<2x8x392xf32>
    %cst_5 = arith.constant dense<0.000000e+00> : vector<2x8xf32>
    %3 = vector.multi_reduction <add>, %2, %cst_5 [2] : vector<2x8x392xf32> to vector<2x8xf32>
    %c0_6 = arith.constant 0 : index
    %c0_7 = arith.constant 0 : index
    %4 = vector.load %arg3[%c0_6, %c0_7] : memref<64x128xf32, #tpu.memory_space<vmem>>, vector<64x128xf32>
    %cst_8 = arith.constant dense<0.000000e+00> : vector<2x128xf32>
    %5 = tpu.matmul %1, %4, %cst_8 {dimension_numbers = #tpu.dot_dimension_numbers<[1], [0], [0], [1], [0, 0, 1, 1], [], []>} : vector<2x64xf32>, vector<64x128xf32>, vector<2x128xf32> -> vector<2x128xf32>
    %c0_9 = arith.constant 0 : index
    %c0_10 = arith.constant 0 : index
    %6 = vector.load %arg4[%c0_9, %c0_10] : memref<8x128xf32, #tpu.memory_space<vmem>>, vector<8x128xf32>
    %cst_11 = arith.constant dense<0.000000e+00> : vector<2x128xf32>
    %7 = tpu.matmul %3, %6, %cst_11 {dimension_numbers = #tpu.dot_dimension_numbers<[1], [0], [0], [1], [0, 0, 1, 1], [], []>} : vector<2x8xf32>, vector<8x128xf32>, vector<2x128xf32> -> vector<2x128xf32>
    %8 = arith.addf %5, %7 : vector<2x128xf32>
    %c0_12 = arith.constant 0 : index
    %c0_13 = arith.constant 0 : index
    %9 = vector.load %arg5[%c0_12, %c0_13] : memref<1x128xf32, #tpu.memory_space<vmem>>, vector<1x128xf32>
    %10 = vector.broadcast %9 : vector<1x128xf32> to vector<2x128xf32>
    %11 = arith.addf %8, %10 : vector<2x128xf32>
    %cst_14 = arith.constant dense<0xFF800000> : vector<2xf32>
    %12 = vector.multi_reduction <maximumf>, %11, %cst_14 [1] : vector<2x128xf32> to vector<2xf32>
    %13 = vector.shape_cast %12 : vector<2xf32> to vector<2x1xf32>
    %14 = vector.broadcast %13 : vector<2x1xf32> to vector<2x128xf32>
    %15 = arith.subf %11, %14 : vector<2x128xf32>
    %16 = math.exp %15 : vector<2x128xf32>
    %cst_15 = arith.constant dense<0.000000e+00> : vector<2xf32>
    %17 = vector.multi_reduction <add>, %16, %cst_15 [1] : vector<2x128xf32> to vector<2xf32>
    %18 = vector.shape_cast %17 : vector<2xf32> to vector<2x1xf32>
    %19 = tpu.reciprocal %18 : vector<2x1xf32> -> vector<2x1xf32>
    %20 = vector.broadcast %19 : vector<2x1xf32> to vector<2x128xf32>
    %21 = arith.mulf %16, %20 : vector<2x128xf32>
    %c0_16 = arith.constant 0 : index
    %c0_17 = arith.constant 0 : index
    %22 = vector.load %arg6[%c0_16, %c0_17] : memref<2x128xf32, #tpu.memory_space<vmem>>, vector<2x128xf32>
    tpu.vector_store %arg6[%c0_16, %c0_17], %21 {strides = array<i32>} : memref<2x128xf32, #tpu.memory_space<vmem>>, vector<2x128xf32>,
    return
  }
  func.func @transform_0(%arg0: i32) -> (i32, i32, i32) {
    %c0_i32 = arith.constant 0 : i32
    %c0_i32_0 = arith.constant 0 : i32
    %c0_i32_1 = arith.constant 0 : i32
    return %arg0, %c0_i32, %c0_i32_0 : i32, i32, i32
  }
  func.func @transform_1(%arg0: i32) -> (i32, i32, i32) {
    %c0_i32 = arith.constant 0 : i32
    %c0_i32_0 = arith.constant 0 : i32
    %c0_i32_1 = arith.constant 0 : i32
    return %arg0, %c0_i32, %c0_i32_0 : i32, i32, i32
  }
  func.func @transform_2(%arg0: i32) -> (i32, i32) {
    %c0_i32 = arith.constant 0 : i32
    %c0_i32_0 = arith.constant 0 : i32
    %c0_i32_1 = arith.constant 0 : i32
    return %c0_i32, %c0_i32_0 : i32, i32
  }
  func.func @transform_3(%arg0: i32) -> (i32, i32) {
    %c0_i32 = arith.constant 0 : i32
    %c0_i32_0 = arith.constant 0 : i32
    %c0_i32_1 = arith.constant 0 : i32
    return %c0_i32, %c0_i32_0 : i32, i32
  }
  func.func @transform_4(%arg0: i32) -> (i32, i32) {
    %c0_i32 = arith.constant 0 : i32
    %c0_i32_0 = arith.constant 0 : i32
    %c0_i32_1 = arith.constant 0 : i32
    return %c0_i32, %c0_i32_0 : i32, i32
  }
  func.func @transform_5(%arg0: i32) -> (i32, i32) {
    %c0_i32 = arith.constant 0 : i32
    %c0_i32_0 = arith.constant 0 : i32
    return %arg0, %c0_i32 : i32, i32
  }
}

</mosaic_0001>

<bundles_post_ra>
// kernel: res_head_forward.1
= control target key start
LH: loop header
LB: loop body
LE: loop exit
PB: predicated region body
PF: predicated region fallthrough
CT: control target
= control target key end

     0   :  { %vm37_vm0 = vcmask 801792   ;;  %s680_s0 = inlined_call_operand.vmem [shape: f32[2,64,98], index: 0, kind: input, shape index: {}]   ;;  %s681_s1 = inlined_call_operand.vmem [shape: f32[2,8,392], index: 1, kind: input, shape index: {}]   ;;  %s682_s2 = inlined_call_operand.vmem [shape: f32[64,128], index: 2, kind: input, shape index: {}]   ;;  %s683_s3 = inlined_call_operand.vmem [shape: f32[8,128], index: 3, kind: input, shape index: {}]   ;;  %s684_s4 = inlined_call_operand.vmem [shape: f32[1,128], index: 4, kind: input, shape index: {}]   ;;  %s685_s5 = inlined_call_operand.hbm [shape: f32[2,128], index: 5, kind: output, shape index: {}]  }
   0x1   :  { %v29_v0 = vld [vmem:[%s680_s0 + $0x40] sm:$0xff]  ;;  %v30_v2 = vld [vmem:[%s680_s0 + $0x48] sm:$0xff]  ;;  %v31_v8 = vld [vmem:[%s680_s0 + $0x50] sm:$0xff] }
   0x2   :  { %v21_v1 = vld [vmem:[%s680_s0] sm:$0xff]  ;;  %v62_v3 = vsel %vm37_vm0, %v29_v0, 0.0  ;;  %v22_v5 = vld [vmem:[%s680_s0 + $0x8] sm:$0xff]  ;;  %v65_v6 = vsel %vm37_vm0, %v30_v2, 0.0  ;;  %v23_v9 = vld [vmem:[%s680_s0 + $0x10] sm:$0xff]  ;;  %v68_v10 = vsel %vm37_vm0, %v31_v8, 0.0 }
   0x3   :  { %v38_v4 = vsel %vm37_vm0, %v21_v1, 0.0  ;;  %63 = vadd.xlane.f32.xlu1 %v62_v3  ;;  %v41_v7 = vsel %vm37_vm0, %v22_v5, 0.0  ;;  %v44_v11 = vsel %vm37_vm0, %v23_v9, 0.0  ;;  %v32_v12 = vld [vmem:[%s680_s0 + $0x58] sm:$0xff] }
   0x4   :  { %39 = vadd.xlane.f32.xlu0 %v38_v4  ;;  %v24_v13 = vld [vmem:[%s680_s0 + $0x18] sm:$0xff] }
   0x7   :  { %66 = vadd.xlane.f32.xlu1 %v65_v6 }
   0x8   :  { %42 = vadd.xlane.f32.xlu0 %v41_v7 }
   0x9   :  { %10 = vsyncpa [#allocation3], 0  ;;  %v71_v14 = vsel %vm37_vm0, %v32_v12, 0.0  ;;  %v47_v15 = vsel %vm37_vm0, %v24_v13, 0.0  ;;  %v33_v16 = vld [vmem:[%s680_s0 + $0x60] sm:$0xff]  ;;  %v34_v20 = vld [vmem:[%s680_s0 + $0x68] sm:$0xff]  ;;  %v118_v3 = vlaneseq }
   0xa   :  { %v25_v17 = vld [vmem:[%s680_s0 + $0x20] sm:$0xff]  ;;  %v74_v18 = vsel %vm37_vm0, %v33_v16, 0.0  ;;  %v26_v21 = vld [vmem:[%s680_s0 + $0x28] sm:$0xff]  ;;  %v77_v23 = vsel %vm37_vm0, %v34_v20, 0.0  ;;  %v35_v28 = vld [vmem:[%s680_s0 + $0x70] sm:$0xff]  ;;  %vm96_vm1 = vcmask 64512  }
   0xb   :  { %69 = vadd.xlane.f32.xlu1 %v68_v10  ;;  %v50_v19 = vsel %vm37_vm0, %v25_v17, 0.0  ;;  %v90_v22 = vld [vmem:[%s681_s1 + $0x20] sm:$0xff]  ;;  %v53_v24 = vsel %vm37_vm0, %v26_v21, 0.0  ;;  %v91_v25 = vld [vmem:[%s681_s1 + $0x28] sm:$0xff]  ;;  %v27_v29 = vld [vmem:[%s680_s0 + $0x30] sm:$0xff]  ;;  %v80_v32 = vsel %vm37_vm0, %v35_v28, 0.0 }
   0xc   :  { %45 = vadd.xlane.f32.xlu0 %v44_v11  ;;  %v86_v26 = vld [vmem:[%s681_s1] sm:$0xff]  ;;  %v87_v27 = vld [vmem:[%s681_s1 + $0x8] sm:$0xff]  ;;  %v101_v30 = vadd.f32 %v91_v25, %v90_v22  ;;  %v56_v33 = vsel %vm37_vm0, %v27_v29, 0.0  ;;  %v36_v34 = vld [vmem:[%s680_s0 + $0x78] sm:$0xff]  ;;  %v501_v51 = vmov 0.0|0.0   ;;  %vm502_vm2 = vmmov 0  }
   0xd   :  { %v94_v31 = vadd.f32 %v87_v27, %v86_v26  ;;  %v92_v35 = vld [vmem:[%s681_s1 + $0x30] sm:$0xff]  ;;  %v28_v37 = vld [vmem:[%s680_s0 + $0x38] sm:$0xff]  ;;  %v83_v42 = vsel %vm37_vm0, %v36_v34, 0.0  ;;  %v107_v48 = vld [vmem:[%s682_s2] sm:$0xff]  ;;  %457 = vmatprep.subr.bf16.mxu1 %v501_v51  ;;  %v503_v61 = vmov 0.0   ;;  %v119_v6 = vand.u32 127, %v118_v3 }
   0xe   :  { %v88_v36 = vld [vmem:[%s681_s1 + $0x10] sm:$0xff]  ;;  %v93_v38 = vld [vmem:[%s681_s1 + $0x38] sm:$0xff]  ;;  %v102_v40 = vadd.f32 %v101_v30, %v92_v35  ;;  %v59_v43 = vsel %vm37_vm0, %v28_v37, 0.0  ;;  %v108_v49 = vld [vmem:[%s682_s2 + $0x8] sm:$0xff]  ;;  %454 = vmatprep.mubr.msk.f32.mxu1 %vm502_vm2, %v503_v61  ;;  %433 = vmatprep.subr.mxu0 %v503_v61  ;;  %v121_v11 = vshrl.u32 %v118_v3, 7  ;;  %vm227_vm3 = vcmask 130112  }
   0xf   :  { %72 = vadd.xlane.f32.xlu1 %v71_v14  ;;  %v89_v39 = vld [vmem:[%s681_s1 + $0x18] sm:$0xff]  ;;  %v95_v41 = vadd.f32 %v94_v31, %v88_v36  ;;  %v103_v44 = vsel %vm96_vm1, %v93_v38, 0.0  ;;  %v458_v50 = vpack.c.bf16 %v108_v49, %v107_v48  ;;  %v109_v52 = vld [vmem:[%s682_s2 + $0x10] sm:$0xff]  ;;  %v111_v55 = vld [vmem:[%s682_s2 + $0x20] sm:$0xff]  ;;  %435 = vmatprep.mubr.msk.f32.mxu0 %vm502_vm2, %v503_v61  ;;  %v222_v9 = vadd.s32 4294967288, %v119_v6  ;;  %s504_s7 = smov [#allocation2]  }
  0x10   :  { %48 = vadd.xlane.f32.xlu0 %v47_v15  ;;  %v97_v45 = vsel %vm96_vm1, %v89_v39, 0.0  ;;  %v104_v46 = vadd.f32 %v103_v44, %v102_v40  ;;  %v110_v53 = vld [vmem:[%s682_s2 + $0x18] sm:$0xff]  ;;  %v112_v56 = vld [vmem:[%s682_s2 + $0x28] sm:$0xff]  ;;  %v113_v58 = vld [vmem:[%s682_s2 + $0x30] sm:$0xff]  ;;  %v229_v10 = vadd.s32 4294967280, %v119_v6  ;;  %v236_v12 = vadd.s32 4294967272, %v119_v6 }
  0x11   :  { %v98_v47 = vadd.f32 %v97_v45, %v95_v41  ;;  %459 = vmatpush3.bf16.msra.mxu1 %v458_v50  ;;  %v461_v54 = vpack.c.bf16 %v110_v53, %v109_v52  ;;  %v464_v57 = vpack.c.bf16 %v112_v56, %v111_v55  ;;  %v114_v59 = vld [vmem:[%s682_s2 + $0x38] sm:$0xff]  ;;  %v115_v62 = vld [vmem:[%s683_s3] sm:$0xff]  ;;  %v243_v13 = vadd.s32 4294967264, %v119_v6  ;;  %s411_s8 = sshll.u32 %s504_s7, 4  ;;  %s412_s8 = int_to_ptr.vmem [resolvable:$true] %s411_s8 }
  0x12   :  { %460 = vmatprep.subr.bf16.mxu1 %v501_v51  ;;  %v467_v60 = vpack.c.bf16 %v114_v59, %v113_v58  ;;  %434 = vmatpush3.msra.mxu0 %v115_v62  ;;  %v225_v16 = vsub.s32 %v222_v9, %v121_v11  ;;  %v250_v17 = vadd.s32 4294967256, %v119_v6  ;;  %v122_v20 = vsub.s32 %v119_v6, %v121_v11  ;;  %p482_p1 = scmp.lt.s32.totalorder %s412_s8, %s412_s8 }
  0x13   :  { %75 = vadd.xlane.f32.xlu1 %v74_v18  ;;  %v232_v18 = vsub.s32 %v229_v10, %v121_v11  ;;  %v239_v21 = vsub.s32 %v236_v12, %v121_v11  ;;  %vm234_vm4 = vcmask 195712   ;;  %v246_v22 = vsub.s32 %v243_v13, %v121_v11 }
  0x14   :  { %51 = vadd.xlane.f32.xlu0 %v50_v19  ;;  %v257_v19 = vadd.s32 4294967248, %v119_v6  ;;  %v264_v25 = vadd.s32 4294967240, %v119_v6  ;;  %vm241_vm5 = vcmask 261312   ;;  %v253_v28 = vsub.s32 %v250_v17, %v121_v11 }
  0x15   :  { %462 = vmatpush3.bf16.msra.mxu1 %v461_v54  ;;  %vm248_vm6 = vcmask 326912   ;;  %vm255_vm7 = vcmask 392512   ;;  %vm262_vm8 = vcmask 458112   ;;  %vm269_vm9 = vcmask 523712  }
  0x16   :  { %463 = vmatprep.subr.bf16.mxu1 %v501_v51  ;;  %v260_v31 = vsub.s32 %v257_v19, %v121_v11  ;;  %v267_v40 = vsub.s32 %v264_v25, %v121_v11  ;;  %vm128_vm10 = vcmask 1041409   ;;  %vm311_vm11 = vcmask 523264  }
  0x17   :  { %78 = vadd.xlane.f32.xlu1 %v77_v23  ;;  %vm392_vm12 = vcmask 1041408  }
  0x18   :  { %54 = vadd.xlane.f32.xlu0 %v53_v24 }
  0x19   :  { %465 = vmatpush3.bf16.msra.mxu1 %v464_v57 }
  0x1a   :  { %466 = vmatprep.subr.bf16.mxu1 %v501_v51 }
  0x1b   :  { %81 = vadd.xlane.f32.xlu1 %v80_v32 }
  0x1c   :  { %57 = vadd.xlane.f32.xlu0 %v56_v33 }
  0x1d   :  { %468 = vmatpush3.bf16.msra.mxu1 %v467_v60 }
  0x1f   :  { %84 = vadd.xlane.f32.xlu1 %v83_v42 }
  0x20   :  { %60 = vadd.xlane.f32.xlu0 %v59_v43 }
  0x23   :  { %105 = vadd.xlane.f32.xlu1 %v104_v46 }
  0x24   :  { %99 = vadd.xlane.f32.xlu0 %v98_v47 }
  0x90   :  { %v64_v63 = vpop.xlane.xlu1 %63 }
  0x91   :  { %v40_v0 = vpop.xlane.xlu0 %39  ;;  %v274_v32 = vrot.slane %v64_v63, %v122_v20 }
  0x92   :  { %v221_v33 = vrot.slane %v40_v0, %v122_v20 }
  0x94   :  { %v67_v1 = vpop.xlane.xlu1 %66 }
  0x95   :  { %v43_v2 = vpop.xlane.xlu0 %42  ;;  %v278_v26 = vrot.slane %v67_v1, %v225_v16 }
  0x96   :  { %v226_v27 = vrot.slane %v43_v2, %v225_v16 }
  0x97   :  { %v279_v41 = vsel %vm227_vm3, %v278_v26, %v274_v32 }
  0x98   :  { %v70_v4 = vpop.xlane.xlu1 %69  ;;  %v228_v42 = vsel %vm227_vm3, %v226_v27, %v221_v33 }
  0x99   :  { %v46_v5 = vpop.xlane.xlu0 %45  ;;  %v283_v29 = vrot.slane %v70_v4, %v232_v18 }
  0x9a   :  { %v233_v30 = vrot.slane %v46_v5, %v232_v18 }
  0x9b   :  { %v284_v45 = vsel %vm234_vm4, %v283_v29, %v279_v41 }
  0x9c   :  { %v73_v7 = vpop.xlane.xlu1 %72  ;;  %v235_v46 = vsel %vm234_vm4, %v233_v30, %v228_v42 }
  0x9d   :  { %v49_v8 = vpop.xlane.xlu0 %48  ;;  %v288_v34 = vrot.slane %v73_v7, %v239_v21 }
  0x9e   :  { %v240_v35 = vrot.slane %v49_v8, %v239_v21  ;;  %v421_v8 = vld [vmem:[%s684_s4] ss:$0 sm:$0xff]  ;;  %s477_s4 = scalar_lea.vmem %s412_s8, 32 }
  0x9f   :  { %v289_v49 = vsel %vm241_vm5, %v288_v34, %v284_v45  ;;  %p478_p0 = scmp.ne.s32.totalorder %s412_s8, %s477_s4  ;;  %p483_p2 = scmp.lt.s32.totalorder %s477_s4, %s477_s4 }
  0xa0   :  { %v76_v14 = vpop.xlane.xlu1 %75  ;;  %v242_v50 = vsel %vm241_vm5, %v240_v35, %v235_v46 }
  0xa1   :  { %v52_v15 = vpop.xlane.xlu0 %51  ;;  %v293_v36 = vrot.slane %v76_v14, %v246_v22  ;;  %p484_p3 = por %p483_p2, %p482_p1 }
  0xa2   :  { %v247_v37 = vrot.slane %v52_v15, %v246_v22 }
  0xa3   :  { %v294_v51 = vsel %vm248_vm6, %v293_v36, %v289_v49  ;;  %p485_p4 = pnand %p484_p3, %p478_p0 }
  0xa4   :  { %v79_v23 = vpop.xlane.xlu1 %78  ;;  %v249_v52 = vsel %vm248_vm6, %v247_v37, %v242_v50 }
  0xa5   :  { %v55_v24 = vpop.xlane.xlu0 %54  ;;  %v298_v43 = vrot.slane %v79_v23, %v253_v28 }
  0xa6   :  { %v254_v44 = vrot.slane %v55_v24, %v253_v28 }
  0xa7   :  { %v299_v55 = vsel %vm255_vm7, %v298_v43, %v294_v51 }
  0xa8   :  { %v82_v38 = vpop.xlane.xlu1 %81  ;;  %v256_v56 = vsel %vm255_vm7, %v254_v44, %v249_v52 }
  0xa9   :  { %v58_v39 = vpop.xlane.xlu0 %57  ;;  %v303_v47 = vrot.slane %v82_v38, %v260_v31 }
  0xaa   :  { %v261_v48 = vrot.slane %v58_v39, %v260_v31 }
  0xab   :  { %v304_v59 = vsel %vm262_vm8, %v303_v47, %v299_v55 }
  0xac   :  { %v85_v53 = vpop.xlane.xlu1 %84  ;;  %v263_v60 = vsel %vm262_vm8, %v261_v48, %v256_v56 }
  0xad   :  { %v61_v54 = vpop.xlane.xlu0 %60  ;;  %v308_v57 = vrot.slane %v85_v53, %v267_v40 }
  0xae   :  { %v268_v58 = vrot.slane %v61_v54, %v267_v40 }
  0xaf   :  { %v309_v61 = vsel %vm269_vm9, %v308_v57, %v304_v59 }
  0xb0   :  { %v270_v62 = vsel %vm269_vm9, %v268_v58, %v263_v60  ;;  %v106_v63 = vpop.xlane.xlu1 %105 }
  0xb1   :  { %v100_v0 = vpop.xlane.xlu0 %99  ;;  %v310_v1 = vsel %vm128_vm10, %v309_v61, %v270_v62  ;;  %v127_v2 = vrot.slane %v106_v63, %v122_v20 }
  0xb2   :  { %v123_v3 = vrot.slane %v100_v0, %v122_v20  ;;  %455 = vmatmul.mubr.msk.f32.vlgmr.msra.gmra.mrb[0].mxu1 %vm311_vm11, %v310_v1 }
  0xb4   :  { %v129_v4 = vsel %vm128_vm10, %v127_v2, %v123_v3 }
  0xb5   :  { %436 = vmatmul.mubr.msk.f32.vlgmr.msra.gmra.mrb[0].mxu0 %vm96_vm1, %v129_v4 }
 0x185   :  { %v380_v5 = vpop.f32.mrb[0].mxu1 }
 0x186   :  { %v456_v6 = vpop.f32.mrb[1].mxu1 }
 0x188   :  { %v198_v7 = vpop.f32.mrb[0].mxu0 }
 0x189   :  { %v381_v9 = vadd.f32 %v380_v5, %v198_v7  ;;  %v437_v10 = vpop.f32.mrb[1].mxu0 }
 0x18b   :  { %v391_v11 = vadd.f32 %v421_v8, %v381_v9 }
 0x18d   :  { %v393_v12 = vsel %vm392_vm12, %v391_v11, -inf }
 0x18e   :  { %394 = vmax.xlane.f32.xlu0 %v393_v12 }
 0x21b   :  { %v395_v13 = vpop.xlane.xlu0 %394 }
 0x21c   :  { %v396_v14 = vsub.f32 %v391_v11, %v395_v13 }
 0x21e   :  { %v397_v15 = vmul.f32 1.442695, %v396_v14 }
 0x220   :  { %473 = vpow2.f32 %v397_v15 }
 0x22a   :  { %v474_v16 = vpop.eup %473 }
 0x22b   :  { %v399_v17 = vsel %vm392_vm12, %v474_v16, 0.0 }
 0x22c   :  { %400 = vadd.xlane.f32.xlu1 %v399_v17 }
 0x2b9   :  { %v401_v18 = vpop.xlane.xlu1 %400 }
 0x2ba   :  { %475 = vrcp.f32 %v401_v18 }
 0x2c4   :  { %v476_v19 = vpop.eup %475 }
 0x2c5   :  { %v403_v20 = vmul.f32 %v476_v19, %v474_v16 }
 0x2c7   :  { %404 = vst [vmem:[#allocation2] sm:$0x3] %v403_v20 }
 0x2c8   :  { %488 = shalt.err (!%p485_p4)
}
 0x2c9   :  { %s489_s11 = scalar_lea.hbm %s685_s5, 32 }
 0x2ca   :  { %p490_p5 = scmp.ne.s32.totalorder %s685_s5, %s489_s11  ;;  %p493_p6 = scmp.lt.u32.totalorder %s489_s11, %s685_s5 }
 0x2cc   :  { %p495_p7 = pnand %p493_p6, %p490_p5 }
 0x2ce   :  { %498 = shalt.err (!%p495_p7)
}
 0x2cf   :  { %414 = dma.vmem_to_hbm [thread:$0]  %s412_s8, 32, %s685_s5, [#allocation3]  }
 0x2d0   :  { %499 = dma.done.wait [#allocation3], 32  }
 0x2d1   :  { %500 = vsyncadd [#allocation3], 4294967264 }
 0x2d2   :  { %418 = vsyncpa [#allocation3], 1 }

</bundles_post_ra>
